<compile_context>
chip_gen: v5e
topology: v5e:2x2
jax: 0.10.0
libtpu: 0.0.40
codegen_flags: <defaults>
</compile_context>

<pallas_src>
import jax
import jax.numpy as jnp
from jax import lax
from jax.experimental import pallas as pl
from jax.experimental.pallas import tpu as pltpu


# ----------------------------- budgets / tiling ----------------------------- #

def _vmem_capacity_bytes():
    """Generation-aware VMEM capacity (128 MiB v5e/v6e, 64 MiB/TC v7x)."""
    try:
        cap = int(pltpu.get_tpu_info().vmem_capacity_bytes)
        if cap > 0:
            return cap
    except Exception:
        pass
    return 64 * 1024 * 1024                      # conservative default (v7x per-core)


def _pick_tile(s_pad, bytes_per_lane, budget_bytes):
    """Largest multiple-of-128 divisor of s_pad whose double-buffered blocks fit."""
    max_lanes = max(128, budget_bytes // max(int(bytes_per_lane), 1))
    best = 128
    for t in range(128, s_pad + 1, 128):
        if t > max_lanes:
            break
        if s_pad % t == 0:
            best = t
    return best


# --------------------- pass 1: cross-batch Gram + spatial sums --------------- #

def _gram_kernel(x0_ref, x1_ref, g_ref, s0_ref, s1_ref, g_acc, s0_acc, s1_acc):
    """Accumulate G += x1_tile @ x0_tile^T and the spatial sums over the reduction axis;
    write the (tiny) results to HBM only at the last reduction step."""
    j = pl.program_id(1)

    @pl.when(j == 0)
    def _init():
        g_acc[...] = jnp.zeros_like(g_acc)
        s0_acc[...] = jnp.zeros_like(s0_acc)
        s1_acc[...] = jnp.zeros_like(s1_acc)

    x0 = x0_ref[...]                              # (B0*C, ts)
    x1 = x1_ref[...]                              # (B1*C, ts)
    # One batched MXU contraction over the lane (spatial) axis per tile (q@k^T pattern).
    g_acc[...] += lax.dot_general(x1, x0,
                                  dimension_numbers=(((1,), (1,)), ((), ())),
                                  preferred_element_type=jnp.float32)
    s0_acc[...] += jnp.sum(x0, axis=1, keepdims=True)
    s1_acc[...] += jnp.sum(x1, axis=1, keepdims=True)

    @pl.when(j == pl.num_programs(1) - 1)
    def _finalize():
        g_ref[...] = g_acc[...]
        s0_ref[...] = s0_acc[...]
        s1_ref[...] = s1_acc[...]


# --------------- pass 2: attention mix + value conv + residual --------------- #

def _apply_kernel(a_ref, b_ref, x0_ref, x1_ref, o_ref):
    """out = x1 + A @ x0 + b  with  A = gamma*kron(attn, Wv), b = gamma*rowsum(attn)*bv."""
    o_ref[...] = (x1_ref[...]
                  + jnp.dot(a_ref[...], x0_ref[...],
                            preferred_element_type=jnp.float32)
                  + b_ref[...])


# --------------------------------- wrapper ----------------------------------- #

def spatial_att_pallas(x0, x1, params):
    Wq, bq, Wk, bk, Wv, bv, gamma = (params[n] for n in
                                     ("Wq", "bq", "Wk", "bk", "Wv", "bv", "gamma"))
    B0, C, W0, H0 = x0.shape
    B1, C1, W1, H1 = x1.shape
    S = W0 * H0
    # torch's mm / residual implicitly require matching channel and spatial sizes
    assert C1 == C and W1 * H1 == S, "x_0 / x_1 must share channel and spatial sizes"

    R0, R1 = B0 * C, B1 * C
    assert R0 * R1 * 4 <= 8 * 1024 * 1024, "Gram/kron path sized for B*C <= ~1400 per side"

    # Flatten (B, C, S) -> (B*C, S): same memory layout, sublane-dense blocks for small C.
    x0f = x0.reshape(R0, S)
    x1f = x1.reshape(R1, S)
    s_pad = ((S + 127) // 128) * 128
    if s_pad != S:
        # Zero padding is exact: padded columns contribute 0 to the Gram and the spatial
        # sums (no bias terms live inside the kernels); pass-2 padded columns are cropped.
        x0f = jnp.pad(x0f, ((0, 0), (0, s_pad - S)))
        x1f = jnp.pad(x1f, ((0, 0), (0, s_pad - S)))

    # Generation-aware VMEM budgets; per-pass tile sizes (pass 1 streams no output block).
    cap = _vmem_capacity_bytes()
    vmem_limit = min(int(cap * 0.75), 100 * 1024 * 1024)
    stream_budget = int(vmem_limit * 0.75)
    fixed1 = (R1 * R0 + R0 + R1) * 4 * 4           # scratch + resident outputs
    fixed2 = (R1 * R0 + R1) * 4 * 4                # resident mixing matrix + bias
    ts1 = _pick_tile(s_pad, (R0 + R1) * 4 * 2, max(stream_budget - fixed1, 1 << 20))
    ts2 = _pick_tile(s_pad, (R0 + 2 * R1) * 4 * 2, max(stream_budget - fixed2, 1 << 20))

    n1 = s_pad // ts1
    P = 2 if n1 % 2 == 0 else 1                    # megacore split of the pass-1 reduction
    n_per_p = n1 // P

    f32 = jnp.float32

    # ---- pass 1: Gram + spatial sums (reduction over spatial tiles) ----------------- #
    gram, s0sum, s1sum = pl.pallas_call(
        _gram_kernel,
        out_shape=(jax.ShapeDtypeStruct((P, R1, R0), f32),
                   jax.ShapeDtypeStruct((P, R0, 1), f32),
                   jax.ShapeDtypeStruct((P, R1, 1), f32)),
        grid=(P, n_per_p),
        in_specs=[pl.BlockSpec((R0, ts1), lambda p, j: (0, p * n_per_p + j)),
                  pl.BlockSpec((R1, ts1), lambda p, j: (0, p * n_per_p + j))],
        out_specs=(pl.BlockSpec((None, R1, R0), lambda p, j: (p, 0, 0)),
                   pl.BlockSpec((None, R0, 1), lambda p, j: (p, 0, 0)),
                   pl.BlockSpec((None, R1, 1), lambda p, j: (p, 0, 0))),
        scratch_shapes=[pltpu.VMEM((R1, R0), f32),
                        pltpu.VMEM((R0, 1), f32),
                        pltpu.VMEM((R1, 1), f32)],
        compiler_params=pltpu.CompilerParams(
            dimension_semantics=("parallel", "arbitrary"),
            vmem_limit_bytes=vmem_limit),
    )(x0f, x1f)

    # ---- tiny (B1,B0) parameter algebra + softmax in plain JAX ---------------------- #
    g0 = gamma[0]
    M = Wk.T @ Wq                                                   # (C, C)
    G4 = gram.sum(0).reshape(B1, C, B0, C)
    energy = jnp.einsum('pq,ipjq->ij', M, G4)
    energy = energy + (s0sum.sum(0).reshape(B0, C) @ (Wq.T @ bk))[None, :]
    energy = energy + (s1sum.sum(0).reshape(B1, C) @ (Wk.T @ bq))[:, None]
    energy = energy + jnp.float32(S) * jnp.dot(bk, bq)
    attn = jax.nn.softmax(energy, axis=-1)                          # (B1, B0)

    # Value conv commutes with the attention mix: fold gamma, attn, Wv, bv into one
    # (B1*C, B0*C) mixing matrix + (B1*C, 1) bias applied per spatial tile on the MXU.
    mix_w = (g0 * jnp.kron(attn, Wv)).astype(f32)                   # (R1, R0)
    mix_b = (g0 * attn.sum(axis=1, keepdims=True) * bv[None, :]).reshape(R1, 1).astype(f32)

    # ---- pass 2: out = x1 + mix_w @ x0 + mix_b, tiled over S ("parallel") ----------- #
    out_flat = pl.pallas_call(
        _apply_kernel,
        out_shape=jax.ShapeDtypeStruct((R1, s_pad), f32),
        grid=(s_pad // ts2,),
        in_specs=[pl.BlockSpec((R1, R0), lambda j: (0, 0)),
                  pl.BlockSpec((R1, 1), lambda j: (0, 0)),
                  pl.BlockSpec((R0, ts2), lambda j: (0, j)),
                  pl.BlockSpec((R1, ts2), lambda j: (0, j))],
        out_specs=pl.BlockSpec((R1, ts2), lambda j: (0, j)),
        compiler_params=pltpu.CompilerParams(
            dimension_semantics=("parallel",),
            vmem_limit_bytes=vmem_limit),
    )(mix_w, mix_b, x0f, x1f)

    if s_pad != S:
        out_flat = out_flat[:, :S]
    return out_flat.reshape(B1, C1, W1, H1)


# --------------------------------- reference --------------------------------- #

def _ref_forward(x0, x1, params):
    Wq, bq, Wk, bk, Wv, bv, gamma = (params[n] for n in
                                     ("Wq", "bq", "Wk", "bk", "Wv", "bv", "gamma"))

    def conv1x1(x, W, b):
        return jnp.einsum("oc,bcij->boij", W, x) + b[None, :, None, None]

    B0, B1 = x0.shape[0], x1.shape[0]
    proj_query = conv1x1(x0, Wq, bq).reshape(B0, -1).T      # (Cq*S, B0)
    proj_key = conv1x1(x1, Wk, bk).reshape(B1, -1)          # (B1, Cq*S)
    energy = proj_key @ proj_query                          # (B1, B0)
    attn = jax.nn.softmax(energy, axis=-1)
    proj_value = conv1x1(x0, Wv, bv).reshape(B0, -1)        # (B0, C*S)
    out = (attn @ proj_value).reshape(x1.shape)
    return gamma[0] * out + x1


# ------------------------------------ main ----------------------------------- #

if __name__ == "__main__":
    B, C, W, H = 2, 4, 16, 16
    Cq = max(C // 4, 1)

    key = jax.random.PRNGKey(0)
    kx0, kx1, kwq, kbq, kwk, kbk, kwv, kbv = jax.random.split(key, 8)

    x0 = jax.random.normal(kx0, (B, C, W, H), dtype=jnp.float32)
    x1 = jax.random.normal(kx1, (B, C, W, H), dtype=jnp.float32)

    # deterministic synthetic parameters (shapes from SpatialAtt.__init__);
    # note: torch inits gamma to 0 — we use 0.5 so the attention path is exercised.
    params = {
        "Wq": 0.1 * jax.random.normal(kwq, (Cq, C), dtype=jnp.float32),
        "bq": 0.1 * jax.random.normal(kbq, (Cq,), dtype=jnp.float32),
        "Wk": 0.1 * jax.random.normal(kwk, (Cq, C), dtype=jnp.float32),
        "bk": 0.1 * jax.random.normal(kbk, (Cq,), dtype=jnp.float32),
        "Wv": 0.1 * jax.random.normal(kwv, (C, C), dtype=jnp.float32),
        "bv": 0.1 * jax.random.normal(kbv, (C,), dtype=jnp.float32),
        "gamma": jnp.array([0.5], dtype=jnp.float32),
    }

    fn = jax.jit(spatial_att_pallas)
    out = jax.block_until_ready(fn(x0, x1, params))
    ref = jax.block_until_ready(_ref_forward(x0, x1, params))

    assert out.shape == (B, C, W, H)
    max_err = float(jnp.max(jnp.abs(out - ref)))
    assert max_err < 1e-4, f"mismatch vs reference: {max_err}"

    print("KERNEL_OK")
</pallas_src>

<mosaic_0001>
module attributes {stable_mosaic.version = 11 : i64} {
  func.func @_apply_kernel(%arg0: i32, %arg1: memref<8x8xf32, #tpu.memory_space<vmem>>, %arg2: memref<8x1xf32, #tpu.memory_space<vmem>>, %arg3: memref<8x256xf32, #tpu.memory_space<vmem>>, %arg4: memref<8x256xf32, #tpu.memory_space<vmem>>, %arg5: memref<8x256xf32, #tpu.memory_space<vmem>>) attributes {dimension_semantics = [#tpu.dimension_semantics<parallel>], iteration_bounds = array<i64: 1>, scalar_prefetch = 0 : i64, scratch_operands = 0 : i64, tpu.core_type = #tpu.core_type<tc>, window_params = [{pipeline_mode = #tpu.pipeline_mode<synchronous>, transform_indices = @transform_0, window_bounds = array<i64: 8, 8>}, {pipeline_mode = #tpu.pipeline_mode<synchronous>, transform_indices = @transform_1, window_bounds = array<i64: 8, 1>}, {transform_indices = @transform_2, window_bounds = array<i64: 8, 256>}, {transform_indices = @transform_3, window_bounds = array<i64: 8, 256>}, {transform_indices = @transform_4, window_bounds = array<i64: 8, 256>}]} {
    %c0 = arith.constant 0 : index
    %c0_0 = arith.constant 0 : index
    %0 = vector.load %arg4[%c0, %c0_0] : memref<8x256xf32, #tpu.memory_space<vmem>>, vector<8x256xf32>
    %c0_1 = arith.constant 0 : index
    %c0_2 = arith.constant 0 : index
    %1 = vector.load %arg1[%c0_1, %c0_2] : memref<8x8xf32, #tpu.memory_space<vmem>>, vector<8x8xf32>
    %c0_3 = arith.constant 0 : index
    %c0_4 = arith.constant 0 : index
    %2 = vector.load %arg3[%c0_3, %c0_4] : memref<8x256xf32, #tpu.memory_space<vmem>>, vector<8x256xf32>
    %cst = arith.constant dense<0.000000e+00> : vector<8x256xf32>
    %3 = tpu.matmul %1, %2, %cst {dimension_numbers = #tpu.dot_dimension_numbers<[1], [0], [0], [1], [0, 0, 1, 1], [], []>} : vector<8x8xf32>, vector<8x256xf32>, vector<8x256xf32> -> vector<8x256xf32>
    %4 = arith.addf %0, %3 : vector<8x256xf32>
    %c0_5 = arith.constant 0 : index
    %c0_6 = arith.constant 0 : index
    %5 = vector.load %arg2[%c0_5, %c0_6] : memref<8x1xf32, #tpu.memory_space<vmem>>, vector<8x1xf32>
    %6 = vector.broadcast %5 : vector<8x1xf32> to vector<8x256xf32>
    %7 = arith.addf %4, %6 : vector<8x256xf32>
    %c0_7 = arith.constant 0 : index
    %c0_8 = arith.constant 0 : index
    %8 = vector.load %arg5[%c0_7, %c0_8] : memref<8x256xf32, #tpu.memory_space<vmem>>, vector<8x256xf32>
    tpu.vector_store %arg5[%c0_7, %c0_8], %7 {strides = array<i32>} : memref<8x256xf32, #tpu.memory_space<vmem>>, vector<8x256xf32>,
    return
  }
  func.func @transform_0(%arg0: i32) -> (i32, i32) {
    %c0_i32 = arith.constant 0 : i32
    %c0_i32_0 = arith.constant 0 : i32
    %c0_i32_1 = arith.constant 0 : i32
    return %c0_i32, %c0_i32_0 : i32, i32
  }
  func.func @transform_1(%arg0: i32) -> (i32, i32) {
    %c0_i32 = arith.constant 0 : i32
    %c0_i32_0 = arith.constant 0 : i32
    %c0_i32_1 = arith.constant 0 : i32
    return %c0_i32, %c0_i32_0 : i32, i32
  }
  func.func @transform_2(%arg0: i32) -> (i32, i32) {
    %c0_i32 = arith.constant 0 : i32
    %c0_i32_0 = arith.constant 0 : i32
    return %c0_i32, %arg0 : i32, i32
  }
  func.func @transform_3(%arg0: i32) -> (i32, i32) {
    %c0_i32 = arith.constant 0 : i32
    %c0_i32_0 = arith.constant 0 : i32
    return %c0_i32, %arg0 : i32, i32
  }
  func.func @transform_4(%arg0: i32) -> (i32, i32) {
    %c0_i32 = arith.constant 0 : i32
    %c0_i32_0 = arith.constant 0 : i32
    return %c0_i32, %arg0 : i32, i32
  }
}

module attributes {stable_mosaic.version = 11 : i64} {
  func.func @_gram_kernel(%arg0: i32, %arg1: i32, %arg2: memref<8x256xf32, #tpu.memory_space<vmem>>, %arg3: memref<8x256xf32, #tpu.memory_space<vmem>>, %arg4: memref<1x8x8xf32, #tpu.memory_space<vmem>>, %arg5: memref<1x8x1xf32, #tpu.memory_space<vmem>>, %arg6: memref<1x8x1xf32, #tpu.memory_space<vmem>>, %arg7: memref<8x8xf32, #tpu.memory_space<vmem>>, %arg8: memref<8x1xf32, #tpu.memory_space<vmem>>, %arg9: memref<8x1xf32, #tpu.memory_space<vmem>>) attributes {dimension_semantics = [#tpu.dimension_semantics<parallel>, #tpu.dimension_semantics<arbitrary>], iteration_bounds = array<i64: 1, 1>, scalar_prefetch = 0 : i64, scratch_operands = 3 : i64, tpu.core_type = #tpu.core_type<tc>, window_params = [{transform_indices = @transform_0, window_bounds = array<i64: 8, 256>}, {transform_indices = @transform_1, window_bounds = array<i64: 8, 256>}, {transform_indices = @transform_2, window_bounds = array<i64: 1, 8, 8>}, {transform_indices = @transform_3, window_bounds = array<i64: 1, 8, 1>}, {transform_indices = @transform_4, window_bounds = array<i64: 1, 8, 1>}]} {
    %c0_i32 = arith.constant 0 : i32
    %0 = arith.cmpi eq, %arg1, %c0_i32 : i32
    %1 = arith.extui %0 : i1 to i32
    %c0_i32_0 = arith.constant 0 : i32
    %2 = arith.cmpi ne, %1, %c0_i32_0 : i32
    scf.if %2 {
      %cst_20 = arith.constant 0.000000e+00 : f32
      %22 = vector.broadcast %cst_20 : f32 to vector<8x8xf32>
      %c0_21 = arith.constant 0 : index
      %c0_22 = arith.constant 0 : index
      %23 = vector.load %arg7[%c0_21, %c0_22] : memref<8x8xf32, #tpu.memory_space<vmem>>, vector<8x8xf32>
      tpu.vector_store %arg7[%c0_21, %c0_22], %22 {strides = array<i32>} : memref<8x8xf32, #tpu.memory_space<vmem>>, vector<8x8xf32>,
      %cst_23 = arith.constant 0.000000e+00 : f32
      %24 = vector.broadcast %cst_23 : f32 to vector<8x1xf32>
      %c0_24 = arith.constant 0 : index
      %c0_25 = arith.constant 0 : index
      %25 = vector.load %arg8[%c0_24, %c0_25] : memref<8x1xf32, #tpu.memory_space<vmem>>, vector<8x1xf32>
      tpu.vector_store %arg8[%c0_24, %c0_25], %24 {strides = array<i32>} : memref<8x1xf32, #tpu.memory_space<vmem>>, vector<8x1xf32>,
      %cst_26 = arith.constant 0.000000e+00 : f32
      %26 = vector.broadcast %cst_26 : f32 to vector<8x1xf32>
      %c0_27 = arith.constant 0 : index
      %c0_28 = arith.constant 0 : index
      %27 = vector.load %arg9[%c0_27, %c0_28] : memref<8x1xf32, #tpu.memory_space<vmem>>, vector<8x1xf32>
      tpu.vector_store %arg9[%c0_27, %c0_28], %26 {strides = array<i32>} : memref<8x1xf32, #tpu.memory_space<vmem>>, vector<8x1xf32>,
    } else {
    }
    %c0 = arith.constant 0 : index
    %c0_1 = arith.constant 0 : index
    %3 = vector.load %arg2[%c0, %c0_1] : memref<8x256xf32, #tpu.memory_space<vmem>>, vector<8x256xf32>
    %c0_2 = arith.constant 0 : index
    %c0_3 = arith.constant 0 : index
    %4 = vector.load %arg3[%c0_2, %c0_3] : memref<8x256xf32, #tpu.memory_space<vmem>>, vector<8x256xf32>
    %c0_4 = arith.constant 0 : index
    %c0_5 = arith.constant 0 : index
    %5 = vector.load %arg7[%c0_4, %c0_5] : memref<8x8xf32, #tpu.memory_space<vmem>>, vector<8x8xf32>
    %cst = arith.constant dense<0.000000e+00> : vector<8x8xf32>
    %6 = tpu.matmul %4, %3, %cst {dimension_numbers = #tpu.dot_dimension_numbers<[1], [1], [0], [0], [0, 0, 1, 0], [], []>} : vector<8x256xf32>, vector<8x256xf32>, vector<8x8xf32> -> vector<8x8xf32>
    %7 = arith.addf %5, %6 : vector<8x8xf32>
    %c0_6 = arith.constant 0 : index
    %c0_7 = arith.constant 0 : index
    %8 = vector.load %arg7[%c0_6, %c0_7] : memref<8x8xf32, #tpu.memory_space<vmem>>, vector<8x8xf32>
    tpu.vector_store %arg7[%c0_6, %c0_7], %7 {strides = array<i32>} : memref<8x8xf32, #tpu.memory_space<vmem>>, vector<8x8xf32>,
    %c0_8 = arith.constant 0 : index
    %c0_9 = arith.constant 0 : index
    %9 = vector.load %arg8[%c0_8, %c0_9] : memref<8x1xf32, #tpu.memory_space<vmem>>, vector<8x1xf32>
    %cst_10 = arith.constant dense<0.000000e+00> : vector<8xf32>
    %10 = vector.multi_reduction <add>, %3, %cst_10 [1] : vector<8x256xf32> to vector<8xf32>
    %11 = vector.shape_cast %10 : vector<8xf32> to vector<8x1xf32>
    %12 = arith.addf %9, %11 : vector<8x1xf32>
    %c0_11 = arith.constant 0 : index
    %c0_12 = arith.constant 0 : index
    %13 = vector.load %arg8[%c0_11, %c0_12] : memref<8x1xf32, #tpu.memory_space<vmem>>, vector<8x1xf32>
    tpu.vector_store %arg8[%c0_11, %c0_12], %12 {strides = array<i32>} : memref<8x1xf32, #tpu.memory_space<vmem>>, vector<8x1xf32>,
    %c0_13 = arith.constant 0 : index
    %c0_14 = arith.constant 0 : index
    %14 = vector.load %arg9[%c0_13, %c0_14] : memref<8x1xf32, #tpu.memory_space<vmem>>, vector<8x1xf32>
    %cst_15 = arith.constant dense<0.000000e+00> : vector<8xf32>
    %15 = vector.multi_reduction <add>, %4, %cst_15 [1] : vector<8x256xf32> to vector<8xf32>
    %16 = vector.shape_cast %15 : vector<8xf32> to vector<8x1xf32>
    %17 = arith.addf %14, %16 : vector<8x1xf32>
    %c0_16 = arith.constant 0 : index
    %c0_17 = arith.constant 0 : index
    %18 = vector.load %arg9[%c0_16, %c0_17] : memref<8x1xf32, #tpu.memory_space<vmem>>, vector<8x1xf32>
    tpu.vector_store %arg9[%c0_16, %c0_17], %17 {strides = array<i32>} : memref<8x1xf32, #tpu.memory_space<vmem>>, vector<8x1xf32>,
    %c0_i32_18 = arith.constant 0 : i32
    %19 = arith.cmpi eq, %arg1, %c0_i32_18 : i32
    %20 = arith.extui %19 : i1 to i32
    %c0_i32_19 = arith.constant 0 : i32
    %21 = arith.cmpi ne, %20, %c0_i32_19 : i32
    scf.if %21 {
      %c0_20 = arith.constant 0 : index
      %c0_21 = arith.constant 0 : index
      %22 = vector.load %arg7[%c0_20, %c0_21] : memref<8x8xf32, #tpu.memory_space<vmem>>, vector<8x8xf32>
      %c0_22 = arith.constant 0 : index
      %c0_23 = arith.constant 0 : index
      %c0_24 = arith.constant 0 : index
      %23 = vector.load %arg4[%c0_22, %c0_23, %c0_24] : memref<1x8x8xf32, #tpu.memory_space<vmem>>, vector<1x8x8xf32>
      %24 = vector.shape_cast %23 : vector<1x8x8xf32> to vector<8x8xf32>
      %25 = vector.shape_cast %22 : vector<8x8xf32> to vector<1x8x8xf32>
      tpu.vector_store %arg4[%c0_22, %c0_23, %c0_24], %25 {strides = array<i32>} : memref<1x8x8xf32, #tpu.memory_space<vmem>>, vector<1x8x8xf32>,
      %c0_25 = arith.constant 0 : index
      %c0_26 = arith.constant 0 : index
      %26 = vector.load %arg8[%c0_25, %c0_26] : memref<8x1xf32, #tpu.memory_space<vmem>>, vector<8x1xf32>
      %c0_27 = arith.constant 0 : index
      %c0_28 = arith.constant 0 : index
      %c0_29 = arith.constant 0 : index
      %27 = vector.load %arg5[%c0_27, %c0_28, %c0_29] : memref<1x8x1xf32, #tpu.memory_space<vmem>>, vector<1x8x1xf32>
      %28 = vector.shape_cast %27 : vector<1x8x1xf32> to vector<8x1xf32>
      %29 = vector.shape_cast %26 : vector<8x1xf32> to vector<1x8x1xf32>
      tpu.vector_store %arg5[%c0_27, %c0_28, %c0_29], %29 {strides = array<i32>} : memref<1x8x1xf32, #tpu.memory_space<vmem>>, vector<1x8x1xf32>,
      %c0_30 = arith.constant 0 : index
      %c0_31 = arith.constant 0 : index
      %30 = vector.load %arg9[%c0_30, %c0_31] : memref<8x1xf32, #tpu.memory_space<vmem>>, vector<8x1xf32>
      %c0_32 = arith.constant 0 : index
      %c0_33 = arith.constant 0 : index
      %c0_34 = arith.constant 0 : index
      %31 = vector.load %arg6[%c0_32, %c0_33, %c0_34] : memref<1x8x1xf32, #tpu.memory_space<vmem>>, vector<1x8x1xf32>
      %32 = vector.shape_cast %31 : vector<1x8x1xf32> to vector<8x1xf32>
      %33 = vector.shape_cast %30 : vector<8x1xf32> to vector<1x8x1xf32>
      tpu.vector_store %arg6[%c0_32, %c0_33, %c0_34], %33 {strides = array<i32>} : memref<1x8x1xf32, #tpu.memory_space<vmem>>, vector<1x8x1xf32>,
    } else {
    }
    return
  }
  func.func @transform_0(%arg0: i32, %arg1: i32) -> (i32, i32) {
    %c1_i32 = arith.constant 1 : i32
    %0 = arith.muli %arg0, %c1_i32 : i32
    %1 = arith.addi %0, %arg1 : i32
    %c0_i32 = arith.constant 0 : i32
    %c0_i32_0 = arith.constant 0 : i32
    return %c0_i32, %1 : i32, i32
  }
  func.func @transform_1(%arg0: i32, %arg1: i32) -> (i32, i32) {
    %c1_i32 = arith.constant 1 : i32
    %0 = arith.muli %arg0, %c1_i32 : i32
    %1 = arith.addi %0, %arg1 : i32
    %c0_i32 = arith.constant 0 : i32
    %c0_i32_0 = arith.constant 0 : i32
    return %c0_i32, %1 : i32, i32
  }
  func.func @transform_2(%arg0: i32, %arg1: i32) -> (i32, i32, i32) {
    %c0_i32 = arith.constant 0 : i32
    %c0_i32_0 = arith.constant 0 : i32
    %c0_i32_1 = arith.constant 0 : i32
    return %arg0, %c0_i32, %c0_i32_0 : i32, i32, i32
  }
  func.func @transform_3(%arg0: i32, %arg1: i32) -> (i32, i32, i32) {
    %c0_i32 = arith.constant 0 : i32
    %c0_i32_0 = arith.constant 0 : i32
    %c0_i32_1 = arith.constant 0 : i32
    return %arg0, %c0_i32, %c0_i32_0 : i32, i32, i32
  }
  func.func @transform_4(%arg0: i32, %arg1: i32) -> (i32, i32, i32) {
    %c0_i32 = arith.constant 0 : i32
    %c0_i32_0 = arith.constant 0 : i32
    %c0_i32_1 = arith.constant 0 : i32
    return %arg0, %c0_i32, %c0_i32_0 : i32, i32, i32
  }
}

</mosaic_0001>

<bundles_post_ra>
// kernel: spatial_att_pallas.3
= control target key start
LH: loop header
LB: loop body
LE: loop exit
PB: predicated region body
PF: predicated region fallthrough
CT: control target
= control target key end

     0   :  { %vm22_vm0 = vcmask 64512   ;;  %v86_v3 = vmov 0   ;;  %s136_s2 = inlined_call_operand.vmem [shape: f32[8,256], index: 2, kind: input, shape index: {}]   ;;  %s137_s0 = inlined_call_operand.vmem [shape: f32[8,8], index: 0, kind: input, shape index: {}]   ;;  %s138_s1 = inlined_call_operand.vmem [shape: f32[8,1], index: 1, kind: input, shape index: {}]   ;;  %s139_s3 = inlined_call_operand.vmem [shape: f32[8,256], index: 3, kind: input, shape index: {}]   ;;  %s140_s4 = inlined_call_operand.vmem [shape: f32[8,256], index: 4, kind: output, shape index: {}]  }
   0x1   :  { %v20_v0 = vld [vmem:[%s136_s2] sm:$0xff]  ;;  %v21_v1 = vld [vmem:[%s136_s2 + $0x8] sm:$0xff]  ;;  %85 = vset.pattern.permute.xlu0 %v86_v3 }
   0x2   :  { %v19_v2 = vld [vmem:[%s137_s0] sm:$0xff]  ;;  %41 = vmatpush.msra.mxu0 %v20_v0  ;;  %61 = vmatpush.msra.mxu1 %v21_v1  ;;  %v18_v6 = vld [vmem:[%s139_s3 + $0x8] sm:$0xff] }
   0x3   :  { %v68_v4 = vld [vmem:[%s138_s1] sm:$0xff]  ;;  %82 = vmatmul.msk.f32.vlgmr.msra.gmra.mxu0 %vm22_vm0, %v19_v2  ;;  %83 = vmatmul.msk.f32.vlgmr.msra.gmra.mxu1 %vm22_vm0, %v19_v2 }
   0x4   :  { %71 = vperm.xlu0 %85, %v68_v4   ;;  %v17_v5 = vld [vmem:[%s139_s3] sm:$0xff] }
  0x76   :  { %v72_v7 = vpop.permute.xlu0 %71 }
  0x80   :  { %v43_v8 = vpop.f32.mrf.mxu0  ;;  %v63_v9 = vpop.f32.mrf.mxu1 }
  0x81   :  { %v66_v10 = vadd.f32 %v43_v8, %v17_v5  ;;  %v67_v11 = vadd.f32 %v63_v9, %v18_v6 }
  0x83   :  { %v74_v12 = vadd.f32 %v72_v7, %v66_v10  ;;  %v75_v13 = vadd.f32 %v72_v7, %v67_v11 }
  0x85   :  { %76 = vst [vmem:[%s140_s4] sm:$0xff] %v74_v12 }
  0x86   :  { %77 = vst [vmem:[%s140_s4 + $0x8] sm:$0xff] %v75_v13 }

// kernel: spatial_att_pallas.2
= control target key start
LH: loop header
LB: loop body
LE: loop exit
PB: predicated region body
PF: predicated region fallthrough
CT: control target
= control target key end

     0   :  { %vm64_vm0 = vcmask 7168   ;;  %v162_v2 = vmov 0.0   ;;  %vm62_vm1 = vcmask 64512   ;;  %s218_s0 = inlined_call_operand.vmem [shape: f32[8,256], index: 0, kind: input, shape index: {}]   ;;  %s219_s1 = inlined_call_operand.vmem [shape: f32[8,256], index: 1, kind: input, shape index: {}]   ;;  %s220_s3 = inlined_call_operand.vmem [shape: f32[1,8,1], index: 3, kind: output, shape index: {1}]   ;;  %s221_s4 = inlined_call_operand.vmem [shape: f32[1,8,1], index: 4, kind: output, shape index: {2}]   ;;  %s222_s2 = inlined_call_operand.vmem [shape: f32[1,8,8], index: 2, kind: output, shape index: {0}]  }
   0x1   :  { %v67_v0 = vld [vmem:[%s218_s0] sm:$0xff]  ;;  %v68_v1 = vld [vmem:[%s218_s0 + $0x8] sm:$0xff]  ;;  %65 = vst.msk [vmem:[#allocation3] sm:$0xff] %vm64_vm0, %v162_v2 }
   0x2   :  { %87 = vmatpush.xpose.msra.mxu0 %v67_v0  ;;  %107 = vmatpush.xpose.msra.mxu1 %v68_v1  ;;  %v69_v3 = vld [vmem:[%s219_s1] sm:$0xff]  ;;  %v70_v4 = vld [vmem:[%s219_s1 + $0x8] sm:$0xff]  ;;  %v116_v5 = vadd.f32 %v68_v1, %v67_v0  ;;  %66 = vst.msk [vmem:[#allocation4] sm:$0xff] %vm64_vm0, %v162_v2 }
   0x3   :  { %v123_v6 = vadd.f32 %v70_v4, %v69_v3  ;;  %63 = vst.msk [vmem:[#allocation2] sm:$0xff] %vm62_vm1, %v162_v2 }
   0x4   :  { %117 = vadd.xlane.f32.xlu0 %v116_v5 }
   0x5   :  { %88 = vmatmul.f32.vlgmr.msra.gmra.mxu0 %v69_v3  ;;  %108 = vmatmul.f32.vlgmr.msra.gmra.mxu1 %v70_v4 }
   0x8   :  { %v115_v7 = vld [vmem:[#allocation3] sm:$0xff] }
   0x9   :  { %v122_v10 = vld [vmem:[#allocation4] sm:$0xff] }
   0xa   :  { %v71_v15 = vld [vmem:[#allocation2] sm:$0xff] }
   0xc   :  { %124 = vadd.xlane.f32.xlu0 %v123_v6 }
  0x77   :  { %v118_v8 = vpop.xlane.xlu0 %117 }
  0x78   :  { %v119_v9 = vadd.f32 %v118_v8, %v115_v7 }
  0x7a   :  { %121 = vst.msk [vmem:[#allocation3] sm:$0xff] %vm64_vm0, %v119_v9 }
  0x7f   :  { %v125_v11 = vpop.xlane.xlu0 %124 }
  0x80   :  { %v126_v12 = vadd.f32 %v125_v11, %v122_v10 }
  0x81   :  { %v133_v13 = vld [vmem:[#allocation3] sm:$0xff] }
  0x82   :  { %134 = vst.msk [vmem:[%s220_s3] sm:$0xff] %vm64_vm0, %v133_v13  ;;  %v89_v14 = vpop.f32.mrf.mxu0  ;;  %v109_v16 = vpop.f32.mrf.mxu1 }
  0x83   :  { %v110_v17 = vadd.f32 %v109_v16, %v89_v14  ;;  %127 = vst.msk [vmem:[#allocation4] sm:$0xff] %vm64_vm0, %v126_v12 }
  0x85   :  { %v112_v18 = vadd.f32 %v110_v17, %v71_v15 }
  0x87   :  { %114 = vst.msk [vmem:[#allocation2] sm:$0xff] %vm62_vm1, %v112_v18 }
  0x8a   :  { %v135_v19 = vld [vmem:[#allocation4] sm:$0xff] }
  0x8b   :  { %136 = vst.msk [vmem:[%s221_s4] sm:$0xff] %vm64_vm0, %v135_v19 }
  0x8e   :  { %v131_v20 = vld [vmem:[#allocation2] sm:$0xff] }
  0x8f   :  { %132 = vst.msk [vmem:[%s222_s2] sm:$0xff] %vm62_vm1, %v131_v20 }

</bundles_post_ra>
